<compile_context>
chip_gen: v7x
topology: tpu7x:2x2x1
jax: 0.10.0
libtpu: 0.0.40
codegen_flags: <defaults>
</compile_context>

<pallas_src>
import functools

import jax
import jax.numpy as jnp
from jax.experimental import pallas as pl
from jax.experimental.pallas import tpu as pltpu


def _mhsa_kernel(x_ref, w_ref, o_ref, *, batch, seq_len, num_heads, head_dim):
    """x_ref: (B*S, E); w_ref: (E, 3*H*Hd) = [Q heads | K heads | V heads];
    o_ref: (B*S, H*Hd)."""
    B, S, H, Hd = batch, seq_len, num_heads, head_dim
    HD = H * Hd

    # One fused projection for every batch row, every head, Q/K/V at once.
    qkv = jnp.dot(x_ref[...], w_ref[...], preferred_element_type=jnp.float32)

    # Causal additive bias: 0 on/below diagonal, large-negative above.
    row = jax.lax.broadcasted_iota(jnp.int32, (S, S), 0)
    col = jax.lax.broadcasted_iota(jnp.int32, (S, S), 1)
    bias = jnp.where(row >= col, 0.0, -1e30).astype(jnp.float32)

    scale = jnp.float32(1.0 / (Hd ** 0.5))

    per_batch = []
    for b in range(B):            # static, tiny (unrolled)
        rows = slice(b * S, (b + 1) * S)
        heads = []
        for h in range(H):        # static, tiny (unrolled)
            q = qkv[rows, h * Hd:(h + 1) * Hd]                     # (S, Hd)
            k = qkv[rows, HD + h * Hd:HD + (h + 1) * Hd]           # (S, Hd)
            v = qkv[rows, 2 * HD + h * Hd:2 * HD + (h + 1) * Hd]   # (S, Hd)

            s = jnp.dot(q, k.T, preferred_element_type=jnp.float32) * scale + bias
            m = jnp.max(s, axis=-1, keepdims=True)
            e = jnp.exp(s - m)
            inv = pl.reciprocal(jnp.sum(e, axis=-1, keepdims=True), approx=False)
            p = e * inv
            heads.append(jnp.dot(p, v, preferred_element_type=jnp.float32))
        per_batch.append(jnp.concatenate(heads, axis=-1))           # (S, H*Hd)

    out = jnp.concatenate(per_batch, axis=0)                        # (B*S, H*Hd)
    # Single full-width store; rounding applied once.
    o_ref[...] = jnp.round(out, 4)


def multi_headed_self_attention(embedded, wq, wk, wv):
    """embedded: (B, S, E) f32; wq/wk/wv: (H, E, Hd). Returns (B, S, H*Hd)."""
    B, S, E = embedded.shape
    H, _, Hd = wq.shape

    # Host-side fusion: all heads' Q|K|V as one (E, 3*H*Hd) matrix.
    def cat_heads(w):  # (H, E, Hd) -> (E, H*Hd)
        return jnp.transpose(w, (1, 0, 2)).reshape(E, H * Hd)

    w_fused = jnp.concatenate([cat_heads(wq), cat_heads(wk), cat_heads(wv)], axis=1)
    x2d = embedded.reshape(B * S, E)  # fold batch into the projection M-dim

    kernel = functools.partial(
        _mhsa_kernel, batch=B, seq_len=S, num_heads=H, head_dim=Hd
    )

    out2d = pl.pallas_call(
        kernel,
        out_shape=jax.ShapeDtypeStruct((B * S, H * Hd), jnp.float32),
        in_specs=[
            pl.BlockSpec(memory_space=pltpu.MemorySpace.VMEM),
            pl.BlockSpec(memory_space=pltpu.MemorySpace.VMEM),
        ],
        out_specs=pl.BlockSpec(memory_space=pltpu.MemorySpace.VMEM),
    )(x2d, w_fused)

    return out2d.reshape(B, S, H * Hd)


if __name__ == "__main__":
    # Shapes implied by the module: B=2, S=2, embedding_dim=3,
    # attention_dim=4, num_heads=2 -> head_dim=2.
    B, S, E = 2, 2, 3
    num_heads = 2
    attention_dim = 4
    head_dim = attention_dim // num_heads

    key = jax.random.PRNGKey(0)
    kx, kq, kk, kv = jax.random.split(key, 4)

    embedded = jax.random.normal(kx, (B, S, E), dtype=jnp.float32)

    # The torch module re-seeds per head, so every head gets identical weights;
    # replicate single-head weights H times. nn.Linear(E, Hd, bias=False) is
    # x @ W.T; we store W already transposed as (E, Hd).
    bound = 1.0 / (E ** 0.5)  # torch Linear default init range
    wq1 = jax.random.uniform(kq, (E, head_dim), jnp.float32, -bound, bound)
    wk1 = jax.random.uniform(kk, (E, head_dim), jnp.float32, -bound, bound)
    wv1 = jax.random.uniform(kv, (E, head_dim), jnp.float32, -bound, bound)
    wq = jnp.broadcast_to(wq1, (num_heads, E, head_dim))
    wk = jnp.broadcast_to(wk1, (num_heads, E, head_dim))
    wv = jnp.broadcast_to(wv1, (num_heads, E, head_dim))

    out = multi_headed_self_attention(embedded, wq, wk, wv)
    out = jax.block_until_ready(out)

    # Pure-JAX reference mirroring the torch module exactly.
    def ref(x, wq, wk, wv):
        outs = []
        for h in range(num_heads):
            q = x @ wq[h]
            k = x @ wk[h]
            v = x @ wv[h]
            s = (q @ jnp.swapaxes(k, 1, 2)) / (head_dim ** 0.5)
            mask = jnp.tril(jnp.ones((S, S))) == 0
            s = jnp.where(mask, -jnp.inf, s)
            p = jax.nn.softmax(s, axis=2)
            outs.append(p @ v)
        return jnp.round(jnp.concatenate(outs, axis=2), 4)

    expected = ref(embedded, wq, wk, wv)
    assert out.shape == (B, S, attention_dim)
    # Output is rounded to 4 decimals; allow at most one last-decimal flip from
    # float associativity (reciprocal-multiply vs divide).
    assert jnp.allclose(out, expected, atol=1e-4), (out, expected)

    print("KERNEL_OK")
</pallas_src>

<mosaic_0001>
module attributes {stable_mosaic.version = 11 : i64} {
  func.func @_mhsa_kernel(%arg0: memref<4x3xf32, #tpu.memory_space<vmem>>, %arg1: memref<3x12xf32, #tpu.memory_space<vmem>>, %arg2: memref<4x4xf32, #tpu.memory_space<vmem>>) attributes {dimension_semantics = [], scalar_prefetch = 0 : i64, scratch_operands = 0 : i64, tpu.core_type = #tpu.core_type<tc>} {
    %c0 = arith.constant 0 : index
    %c0_0 = arith.constant 0 : index
    %0 = vector.load %arg0[%c0, %c0_0] : memref<4x3xf32, #tpu.memory_space<vmem>>, vector<4x3xf32>
    %c0_1 = arith.constant 0 : index
    %c0_2 = arith.constant 0 : index
    %1 = vector.load %arg1[%c0_1, %c0_2] : memref<3x12xf32, #tpu.memory_space<vmem>>, vector<3x12xf32>
    %cst = arith.constant dense<0.000000e+00> : vector<4x12xf32>
    %2 = tpu.matmul %0, %1, %cst {dimension_numbers = #tpu.dot_dimension_numbers<[1], [0], [0], [1], [0, 0, 1, 1], [], []>} : vector<4x3xf32>, vector<3x12xf32>, vector<4x12xf32> -> vector<4x12xf32>
    %3 = tpu.iota {dimensions = array<i32: 0>} : vector<2x2xi32>
    %4 = tpu.iota {dimensions = array<i32: 1>} : vector<2x2xi32>
    %5 = arith.cmpi sge, %3, %4 : vector<2x2xi32>
    %cst_3 = arith.constant 0.000000e+00 : f32
    %cst_4 = arith.constant -1.000000e+30 : f32
    %6 = vector.broadcast %cst_3 : f32 to vector<2x2xf32>
    %7 = vector.broadcast %cst_4 : f32 to vector<2x2xf32>
    %8 = arith.select %5, %6, %7 : vector<2x2xi1>, vector<2x2xf32>
    %9 = vector.extract_strided_slice %2 {offsets = [0, 0], sizes = [2, 2], strides = [1, 1]} : vector<4x12xf32> to vector<2x2xf32>
    %10 = vector.extract_strided_slice %2 {offsets = [0, 4], sizes = [2, 2], strides = [1, 1]} : vector<4x12xf32> to vector<2x2xf32>
    %11 = vector.extract_strided_slice %2 {offsets = [0, 8], sizes = [2, 2], strides = [1, 1]} : vector<4x12xf32> to vector<2x2xf32>
    %12 = tpu.transpose %10, [1, 0] : vector<2x2xf32> -> vector<2x2xf32>
    %cst_5 = arith.constant dense<0.000000e+00> : vector<2x2xf32>
    %13 = tpu.matmul %9, %12, %cst_5 {dimension_numbers = #tpu.dot_dimension_numbers<[1], [0], [0], [1], [0, 0, 1, 1], [], []>} : vector<2x2xf32>, vector<2x2xf32>, vector<2x2xf32> -> vector<2x2xf32>
    %cst_6 = arith.constant 0.707106769 : f32
    %14 = vector.broadcast %cst_6 : f32 to vector<2x2xf32>
    %15 = arith.mulf %13, %14 : vector<2x2xf32>
    %16 = arith.addf %15, %8 : vector<2x2xf32>
    %cst_7 = arith.constant dense<0xFF800000> : vector<2xf32>
    %17 = vector.multi_reduction <maximumf>, %16, %cst_7 [1] : vector<2x2xf32> to vector<2xf32>
    %18 = vector.shape_cast %17 : vector<2xf32> to vector<2x1xf32>
    %19 = vector.broadcast %18 : vector<2x1xf32> to vector<2x2xf32>
    %20 = arith.subf %16, %19 : vector<2x2xf32>
    %21 = math.exp %20 : vector<2x2xf32>
    %cst_8 = arith.constant dense<0.000000e+00> : vector<2xf32>
    %22 = vector.multi_reduction <add>, %21, %cst_8 [1] : vector<2x2xf32> to vector<2xf32>
    %23 = vector.shape_cast %22 : vector<2xf32> to vector<2x1xf32>
    %24 = tpu.reciprocal %23 : vector<2x1xf32> -> vector<2x1xf32>
    %25 = vector.broadcast %24 : vector<2x1xf32> to vector<2x2xf32>
    %26 = arith.mulf %21, %25 : vector<2x2xf32>
    %cst_9 = arith.constant dense<0.000000e+00> : vector<2x2xf32>
    %27 = tpu.matmul %26, %11, %cst_9 {dimension_numbers = #tpu.dot_dimension_numbers<[1], [0], [0], [1], [0, 0, 1, 1], [], []>} : vector<2x2xf32>, vector<2x2xf32>, vector<2x2xf32> -> vector<2x2xf32>
    %28 = vector.extract_strided_slice %2 {offsets = [0, 2], sizes = [2, 2], strides = [1, 1]} : vector<4x12xf32> to vector<2x2xf32>
    %29 = vector.extract_strided_slice %2 {offsets = [0, 6], sizes = [2, 2], strides = [1, 1]} : vector<4x12xf32> to vector<2x2xf32>
    %30 = vector.extract_strided_slice %2 {offsets = [0, 10], sizes = [2, 2], strides = [1, 1]} : vector<4x12xf32> to vector<2x2xf32>
    %31 = tpu.transpose %29, [1, 0] : vector<2x2xf32> -> vector<2x2xf32>
    %cst_10 = arith.constant dense<0.000000e+00> : vector<2x2xf32>
    %32 = tpu.matmul %28, %31, %cst_10 {dimension_numbers = #tpu.dot_dimension_numbers<[1], [0], [0], [1], [0, 0, 1, 1], [], []>} : vector<2x2xf32>, vector<2x2xf32>, vector<2x2xf32> -> vector<2x2xf32>
    %cst_11 = arith.constant 0.707106769 : f32
    %33 = vector.broadcast %cst_11 : f32 to vector<2x2xf32>
    %34 = arith.mulf %32, %33 : vector<2x2xf32>
    %35 = arith.addf %34, %8 : vector<2x2xf32>
    %cst_12 = arith.constant dense<0xFF800000> : vector<2xf32>
    %36 = vector.multi_reduction <maximumf>, %35, %cst_12 [1] : vector<2x2xf32> to vector<2xf32>
    %37 = vector.shape_cast %36 : vector<2xf32> to vector<2x1xf32>
    %38 = vector.broadcast %37 : vector<2x1xf32> to vector<2x2xf32>
    %39 = arith.subf %35, %38 : vector<2x2xf32>
    %40 = math.exp %39 : vector<2x2xf32>
    %cst_13 = arith.constant dense<0.000000e+00> : vector<2xf32>
    %41 = vector.multi_reduction <add>, %40, %cst_13 [1] : vector<2x2xf32> to vector<2xf32>
    %42 = vector.shape_cast %41 : vector<2xf32> to vector<2x1xf32>
    %43 = tpu.reciprocal %42 : vector<2x1xf32> -> vector<2x1xf32>
    %44 = vector.broadcast %43 : vector<2x1xf32> to vector<2x2xf32>
    %45 = arith.mulf %40, %44 : vector<2x2xf32>
    %cst_14 = arith.constant dense<0.000000e+00> : vector<2x2xf32>
    %46 = tpu.matmul %45, %30, %cst_14 {dimension_numbers = #tpu.dot_dimension_numbers<[1], [0], [0], [1], [0, 0, 1, 1], [], []>} : vector<2x2xf32>, vector<2x2xf32>, vector<2x2xf32> -> vector<2x2xf32>
    %47 = tpu.concatenate %27, %46 in 1 : vector<2x2xf32>, vector<2x2xf32> -> vector<2x4xf32>
    %48 = vector.extract_strided_slice %2 {offsets = [2, 0], sizes = [2, 2], strides = [1, 1]} : vector<4x12xf32> to vector<2x2xf32>
    %49 = vector.extract_strided_slice %2 {offsets = [2, 4], sizes = [2, 2], strides = [1, 1]} : vector<4x12xf32> to vector<2x2xf32>
    %50 = vector.extract_strided_slice %2 {offsets = [2, 8], sizes = [2, 2], strides = [1, 1]} : vector<4x12xf32> to vector<2x2xf32>
    %51 = tpu.transpose %49, [1, 0] : vector<2x2xf32> -> vector<2x2xf32>
    %cst_15 = arith.constant dense<0.000000e+00> : vector<2x2xf32>
    %52 = tpu.matmul %48, %51, %cst_15 {dimension_numbers = #tpu.dot_dimension_numbers<[1], [0], [0], [1], [0, 0, 1, 1], [], []>} : vector<2x2xf32>, vector<2x2xf32>, vector<2x2xf32> -> vector<2x2xf32>
    %cst_16 = arith.constant 0.707106769 : f32
    %53 = vector.broadcast %cst_16 : f32 to vector<2x2xf32>
    %54 = arith.mulf %52, %53 : vector<2x2xf32>
    %55 = arith.addf %54, %8 : vector<2x2xf32>
    %cst_17 = arith.constant dense<0xFF800000> : vector<2xf32>
    %56 = vector.multi_reduction <maximumf>, %55, %cst_17 [1] : vector<2x2xf32> to vector<2xf32>
    %57 = vector.shape_cast %56 : vector<2xf32> to vector<2x1xf32>
    %58 = vector.broadcast %57 : vector<2x1xf32> to vector<2x2xf32>
    %59 = arith.subf %55, %58 : vector<2x2xf32>
    %60 = math.exp %59 : vector<2x2xf32>
    %cst_18 = arith.constant dense<0.000000e+00> : vector<2xf32>
    %61 = vector.multi_reduction <add>, %60, %cst_18 [1] : vector<2x2xf32> to vector<2xf32>
    %62 = vector.shape_cast %61 : vector<2xf32> to vector<2x1xf32>
    %63 = tpu.reciprocal %62 : vector<2x1xf32> -> vector<2x1xf32>
    %64 = vector.broadcast %63 : vector<2x1xf32> to vector<2x2xf32>
    %65 = arith.mulf %60, %64 : vector<2x2xf32>
    %cst_19 = arith.constant dense<0.000000e+00> : vector<2x2xf32>
    %66 = tpu.matmul %65, %50, %cst_19 {dimension_numbers = #tpu.dot_dimension_numbers<[1], [0], [0], [1], [0, 0, 1, 1], [], []>} : vector<2x2xf32>, vector<2x2xf32>, vector<2x2xf32> -> vector<2x2xf32>
    %67 = vector.extract_strided_slice %2 {offsets = [2, 2], sizes = [2, 2], strides = [1, 1]} : vector<4x12xf32> to vector<2x2xf32>
    %68 = vector.extract_strided_slice %2 {offsets = [2, 6], sizes = [2, 2], strides = [1, 1]} : vector<4x12xf32> to vector<2x2xf32>
    %69 = vector.extract_strided_slice %2 {offsets = [2, 10], sizes = [2, 2], strides = [1, 1]} : vector<4x12xf32> to vector<2x2xf32>
    %70 = tpu.transpose %68, [1, 0] : vector<2x2xf32> -> vector<2x2xf32>
    %cst_20 = arith.constant dense<0.000000e+00> : vector<2x2xf32>
    %71 = tpu.matmul %67, %70, %cst_20 {dimension_numbers = #tpu.dot_dimension_numbers<[1], [0], [0], [1], [0, 0, 1, 1], [], []>} : vector<2x2xf32>, vector<2x2xf32>, vector<2x2xf32> -> vector<2x2xf32>
    %cst_21 = arith.constant 0.707106769 : f32
    %72 = vector.broadcast %cst_21 : f32 to vector<2x2xf32>
    %73 = arith.mulf %71, %72 : vector<2x2xf32>
    %74 = arith.addf %73, %8 : vector<2x2xf32>
    %cst_22 = arith.constant dense<0xFF800000> : vector<2xf32>
    %75 = vector.multi_reduction <maximumf>, %74, %cst_22 [1] : vector<2x2xf32> to vector<2xf32>
    %76 = vector.shape_cast %75 : vector<2xf32> to vector<2x1xf32>
    %77 = vector.broadcast %76 : vector<2x1xf32> to vector<2x2xf32>
    %78 = arith.subf %74, %77 : vector<2x2xf32>
    %79 = math.exp %78 : vector<2x2xf32>
    %cst_23 = arith.constant dense<0.000000e+00> : vector<2xf32>
    %80 = vector.multi_reduction <add>, %79, %cst_23 [1] : vector<2x2xf32> to vector<2xf32>
    %81 = vector.shape_cast %80 : vector<2xf32> to vector<2x1xf32>
    %82 = tpu.reciprocal %81 : vector<2x1xf32> -> vector<2x1xf32>
    %83 = vector.broadcast %82 : vector<2x1xf32> to vector<2x2xf32>
    %84 = arith.mulf %79, %83 : vector<2x2xf32>
    %cst_24 = arith.constant dense<0.000000e+00> : vector<2x2xf32>
    %85 = tpu.matmul %84, %69, %cst_24 {dimension_numbers = #tpu.dot_dimension_numbers<[1], [0], [0], [1], [0, 0, 1, 1], [], []>} : vector<2x2xf32>, vector<2x2xf32>, vector<2x2xf32> -> vector<2x2xf32>
    %86 = tpu.concatenate %66, %85 in 1 : vector<2x2xf32>, vector<2x2xf32> -> vector<2x4xf32>
    %87 = tpu.concatenate %47, %86 in 0 : vector<2x4xf32>, vector<2x4xf32> -> vector<4x4xf32>
    %cst_25 = arith.constant 1.000000e+04 : f32
    %88 = vector.broadcast %cst_25 : f32 to vector<4x4xf32>
    %89 = arith.mulf %87, %88 : vector<4x4xf32>
    %90 = math.roundeven %89 : vector<4x4xf32>
    %cst_26 = arith.constant 1.000000e+04 : f32
    %91 = vector.broadcast %cst_26 : f32 to vector<4x4xf32>
    %92 = arith.divf %90, %91 : vector<4x4xf32>
    %c0_27 = arith.constant 0 : index
    %c0_28 = arith.constant 0 : index
    %93 = vector.load %arg2[%c0_27, %c0_28] : memref<4x4xf32, #tpu.memory_space<vmem>>, vector<4x4xf32>
    tpu.vector_store %arg2[%c0_27, %c0_28], %92 {strides = array<i32>} : memref<4x4xf32, #tpu.memory_space<vmem>>, vector<4x4xf32>,
    return
  }
}

</mosaic_0001>

<bundles_post_ra>
// kernel: tpu_custom_call.1
= control target key start
LH: loop header
LB: loop body
LE: loop exit
PB: predicated region body
PF: predicated region fallthrough
CT: control target
= control target key end

     0   :  { %7 = vsyncpa [#allocation3], 0  ;;  %s1149_s0 = inlined_call_operand.hbm [shape: f32[4,3], index: 0, kind: input, shape index: {}]   ;;  %s1150_s1 = inlined_call_operand.hbm [shape: f32[3,12], index: 1, kind: input, shape index: {}]   ;;  %s1151_s2 = inlined_call_operand.hbm [shape: f32[4,4], index: 2, kind: output, shape index: {}]  }
   0x1   :  { %8 = vsyncpa [#allocation6], 0 }
   0x2   :  { %9 = vsyncpa [#allocation4], 0  ;;  %s1013_s9 = smov [#allocation2]   ;;  %s1014_s11 = smov [#allocation5]  }
   0x3   :  { %s16_s10 = sshll.u32 %s1013_s9, 4  ;;  %s26_s12 = sshll.u32 %s1014_s11, 4  ;;  %s17_s10 = int_to_ptr.vmem [resolvable:$true] %s16_s10  ;;  %s27_s12 = int_to_ptr.vmem [resolvable:$true] %s26_s12 }
   0x4   :  { %s941_s15 = scalar_lea.hbm %s1149_s0, 64 }
   0x5   :  { %p942_p0 = scmp.ne.s32.totalorder %s1149_s0, %s941_s15  ;;  %p945_p1 = scmp.lt.u32.totalorder %s941_s15, %s1149_s0 }
   0x7   :  { %p947_p2 = pnand %p945_p1, %p942_p0 }
   0x9   :  { %950 = shalt.err (!%p947_p2)
}
   0xa   :  { %s951_s20 = scalar_lea.vmem %s17_s10, 64  ;;  %p956_p4 = scmp.lt.s32.totalorder %s17_s10, %s17_s10 }
   0xb   :  { %p952_p3 = scmp.ne.s32.totalorder %s17_s10, %s951_s20  ;;  %p957_p5 = scmp.lt.s32.totalorder %s951_s20, %s951_s20 }
   0xd   :  { %p958_p6 = por %p957_p5, %p956_p4 }
   0xf   :  { %p959_p7 = pnand %p958_p6, %p952_p3 }
  0x11   :  { %962 = shalt.err (!%p959_p7)
}
  0x12   :  { %19 = dma.hbm_to_vmem [thread:$0]  %s1149_s0, 64, %s17_s10, [#allocation3]  }
  0x13   :  { %s963_s25 = scalar_lea.hbm %s1150_s1, 64 }
  0x14   :  { %p964_p8 = scmp.ne.s32.totalorder %s1150_s1, %s963_s25  ;;  %p967_p9 = scmp.lt.u32.totalorder %s963_s25, %s1150_s1 }
  0x16   :  { %p969_p10 = pnand %p967_p9, %p964_p8 }
  0x18   :  { %972 = shalt.err (!%p969_p10)
}
  0x19   :  { %s973_s30 = scalar_lea.vmem %s27_s12, 64  ;;  %p978_p12 = scmp.lt.s32.totalorder %s27_s12, %s27_s12 }
  0x1a   :  { %p974_p11 = scmp.ne.s32.totalorder %s27_s12, %s973_s30  ;;  %p979_p13 = scmp.lt.s32.totalorder %s973_s30, %s973_s30 }
  0x1c   :  { %p980_p0 = por %p979_p13, %p978_p12 }
  0x1e   :  { %p981_p1 = pnand %p980_p0, %p974_p11 }
  0x20   :  { %984 = shalt.err (!%p981_p1)
}
  0x21   :  { %29 = dma.hbm_to_vmem [thread:$0]  %s1150_s1, 64, %s27_s12, [#allocation6]  }
  0x22   :  { %1007 = dma.done.wait [#allocation3], 64  }
  0x23   :  { %1008 = vsyncadd [#allocation3], 4294967232 }
  0x24   :  { %1009 = dma.done.wait [#allocation6], 64  }
  0x25   :  { %1010 = vsyncadd [#allocation6], 4294967232  ;;  %v1015_v0 = vmov 0.0   ;;  %vm1016_vm0 = vmmov 0   ;;  %vm42_vm1 = vcmask 1042432   ;;  %vm38_vm2 = vcmask 23552  }
  0x26   :  { %867 = vmatprep.subr.mxu0 %v1015_v0  ;;  %869 = vmatprep.mubr.msk.f32.mxu0 %vm1016_vm0, %v1015_v0  ;;  %v37_v1 = vld [vmem:[#allocation5] sm:$0x7]  ;;  %v36_v2 = vld [vmem:[#allocation2] sm:$0xf]  ;;  %s1017_s1 = smov 126   ;;  %s1018_s4 = smov 124   ;;  %v116_v12 = vlaneseq }
  0x27   :  { %872 = vmatprep.subr.mxu1 %v1015_v0  ;;  %874 = vmatprep.mubr.msk.f32.mxu1 %vm1016_vm0, %v1015_v0  ;;  %s1019_s5 = smov 122   ;;  %vm125_vm3 = vcmask 15360   ;;  %v1020_v16 = vmov -1e+30   ;;  %vm202_vm5 = vcmask 9216   ;;  %s1021_s6 = smov 120  }
  0x28   :  { %868 = vmatpush3.msk.msra.mxu0 %vm42_vm1, %v37_v1  ;;  %v117_v13 = vshrl.u32 %v116_v12, 7  ;;  %v119_v14 = vand.u32 127, %v116_v12  ;;  %vm219_vm6 = vcmask 1041408   ;;  %s1022_s7 = smov 118   ;;  %s1023_s8 = smov 2   ;;  %vm813_vm7 = vcmask 27648  }
  0x29   :  { %870 = vmatmul.mubr.msk.f32.vlgmr.msra.gmra.mrb[0].mxu0 %vm38_vm2, %v36_v2  ;;  %877 = vmatprep.subr.mxu0 %v1015_v0  ;;  %s1024_s9 = smov [#allocation7]  }
  0x2a   :  { %879 = vmatprep.mubr.msk.f32.mxu0 %vm1016_vm0, %v1015_v0  ;;  %vm120_vm4 = vcmp.ge.s32.totalorder %v117_v13, %v119_v14  ;;  %s821_s10 = sshll.u32 %s1024_s9, 4  ;;  %s822_s10 = int_to_ptr.vmem [resolvable:$true] %s821_s10 }
  0x2b   :  { %v121_v17 = vsel %vm120_vm4, 0.0, %v1020_v16  ;;  %s985_s11 = scalar_lea.vmem %s822_s10, 64  ;;  %p990_p3 = scmp.lt.s32.totalorder %s822_s10, %s822_s10 }
  0x2c   :  { %p986_p2 = scmp.ne.s32.totalorder %s822_s10, %s985_s11  ;;  %p991_p4 = scmp.lt.s32.totalorder %s985_s11, %s985_s11 }
  0x2e   :  { %p992_p5 = por %p991_p4, %p990_p3 }
  0x30   :  { %p993_p6 = pnand %p992_p5, %p986_p2 }
  0xfc   :  { %v1073_v3 = vpop.f32.mrb[0].mxu0 }
  0xfd   :  { %292 = vrot.lane.b32.xlu1 %v1073_v3, %s1017_s1  ;;  %123 = vrot.lane.b32.xlu0 %v1073_v3, %s1018_s4  ;;  %v871_v4 = vpop.f32.mrb[1].mxu0  ;;  %v1078_v5 = vrot.slane %v1073_v3, 2 }
 0x101   :  { %294 = vrot.lane.b32.xlu0 %v1073_v3, %s1019_s5  ;;  %466 = vrot.lane.b32.xlu1 %v1078_v5, %s1018_s4 }
 0x105   :  { %634 = vrot.lane.b32.xlu0 %v1078_v5, %s1019_s5  ;;  %632 = vrot.lane.b32.xlu1 %v1078_v5, %s1017_s1 }
 0x16f   :  { %v124_v6 = vpop.permute.xlu0 %123  ;;  %v293_v7 = vpop.permute.xlu1 %292 }
 0x170   :  { %873 = vmatpush3.xpose.msk.msra.mxu1 %vm125_vm3, %v124_v6 }
 0x171   :  { %882 = vmatprep.subr.mxu1 %v1015_v0 }
 0x173   :  { %875 = vmatmul.mubr.msk.f32.vlgmr.msra.gmra.mrb[0].mxu1 %vm125_vm3, %v1073_v3  ;;  %v295_v8 = vpop.permute.xlu0 %294  ;;  %v467_v9 = vpop.permute.xlu1 %466 }
 0x174   :  { %883 = vmatpush3.xpose.msk.msra.mxu1 %vm125_vm3, %v295_v8  ;;  %884 = vmatprep.mubr.msk.f32.mxu1 %vm1016_vm0, %v1015_v0 }
 0x175   :  { %892 = vmatprep.subr.mxu1 %v1015_v0 }
 0x177   :  { %885 = vmatmul.mubr.msk.f32.vlgmr.msra.gmra.mrb[2].mxu1 %vm125_vm3, %v293_v7  ;;  %v635_v10 = vpop.permute.xlu0 %634  ;;  %v633_v11 = vpop.permute.xlu1 %632 }
 0x178   :  { %893 = vmatpush3.xpose.msk.msra.mxu1 %vm125_vm3, %v467_v9  ;;  %894 = vmatprep.mubr.msk.f32.mxu1 %vm1016_vm0, %v1015_v0 }
 0x179   :  { %902 = vmatprep.subr.mxu1 %v1015_v0 }
 0x17b   :  { %895 = vmatmul.mubr.msk.f32.vlgmr.msra.gmra.mrb[4].mxu1 %vm125_vm3, %v1078_v5 }
 0x17c   :  { %903 = vmatpush3.xpose.msk.msra.mxu1 %vm125_vm3, %v635_v10  ;;  %904 = vmatprep.mubr.msk.f32.mxu1 %vm1016_vm0, %v1015_v0 }
 0x17f   :  { %905 = vmatmul.mubr.msk.f32.vlgmr.msra.gmra.mrb[6].mxu1 %vm125_vm3, %v633_v11 }
 0x246   :  { %v196_v15 = vpop.f32.mrb[0].mxu1 }
 0x247   :  { %v200_v18 = vmul.f32 0.70710677, %v196_v15  ;;  %v876_v19 = vpop.f32.mrb[1].mxu1 }
 0x249   :  { %v201_v20 = vadd.f32 %v200_v18, %v121_v17 }
 0x24a   :  { %v366_v21 = vpop.f32.mrb[2].mxu1 }
 0x24b   :  { %v370_v22 = vmul.f32 0.70710677, %v366_v21  ;;  %v886_v23 = vpop.f32.mrb[3].mxu1  ;;  %v203_v24 = vsel %vm202_vm5, %v201_v20, -inf }
 0x24c   :  { %204 = vmax.xlane.f32.xlu0 %v203_v24 }
 0x24d   :  { %v371_v25 = vadd.f32 %v370_v22, %v121_v17 }
 0x24e   :  { %v538_v26 = vpop.f32.mrb[4].mxu1 }
 0x24f   :  { %v542_v27 = vmul.f32 0.70710677, %v538_v26  ;;  %v896_v28 = vpop.f32.mrb[5].mxu1  ;;  %v372_v29 = vsel %vm202_vm5, %v371_v25, -inf }
 0x250   :  { %373 = vmax.xlane.f32.xlu1 %v372_v29 }
 0x251   :  { %v543_v30 = vadd.f32 %v542_v27, %v121_v17 }
 0x252   :  { %v706_v31 = vpop.f32.mrb[6].mxu1 }
 0x253   :  { %v710_v32 = vmul.f32 0.70710677, %v706_v31  ;;  %v906_v33 = vpop.f32.mrb[7].mxu1  ;;  %v544_v34 = vsel %vm202_vm5, %v543_v30, -inf }
 0x254   :  { %545 = vmax.xlane.f32.xlu0 %v544_v34 }
 0x255   :  { %v711_v35 = vadd.f32 %v710_v32, %v121_v17 }
 0x257   :  { %v712_v36 = vsel %vm202_vm5, %v711_v35, -inf }
 0x258   :  { %713 = vmax.xlane.f32.xlu0 %v712_v36 }
 0x261   :  { %214 = vrot.lane.b32.xlu1 %v1073_v3, %s1021_s6 }
 0x2d9   :  { %v205_v37 = vpop.xlane.xlu0 %204 }
 0x2da   :  { %v206_v38 = vsub.f32 %v201_v20, %v205_v37 }
 0x2dc   :  { %v207_v39 = vmul.f32 1.442695, %v206_v38 }
 0x2dd   :  { %v374_v40 = vpop.xlane.xlu1 %373 }
 0x2de   :  { %925 = vpow2.f32 %v207_v39  ;;  %v375_v41 = vsub.f32 %v371_v25, %v374_v40 }
 0x2e0   :  { %v376_v42 = vmul.f32 1.442695, %v375_v41 }
 0x2e1   :  { %v546_v43 = vpop.xlane.xlu0 %545  ;;  %v215_v44 = vpop.permute.xlu1 %214 }
 0x2e2   :  { %927 = vpow2.f32 %v376_v42  ;;  %v547_v45 = vsub.f32 %v543_v30, %v546_v43  ;;  %878 = vmatpush3.msk.msra.mxu0 %vm219_vm6, %v215_v44 }
 0x2e3   :  { %887 = vmatprep.subr.mxu0 %v1015_v0 }
 0x2e4   :  { %v548_v46 = vmul.f32 1.442695, %v547_v45 }
 0x2e5   :  { %v714_v47 = vpop.xlane.xlu0 %713 }
 0x2e6   :  { %929 = vpow2.f32 %v548_v46  ;;  %v715_v48 = vsub.f32 %v711_v35, %v714_v47 }
 0x2e8   :  { %v926_v49 = vpop.eup %925  ;;  %v716_v50 = vmul.f32 1.442695, %v715_v48 }
 0x2e9   :  { %v209_v51 = vsel %vm202_vm5, %v926_v49, 0.0 }
 0x2ea   :  { %931 = vpow2.f32 %v716_v50  ;;  %210 = vadd.xlane.f32.xlu1 %v209_v51 }
 0x2ec   :  { %v928_v52 = vpop.eup %927 }
 0x2ed   :  { %v378_v53 = vsel %vm202_vm5, %v928_v52, 0.0 }
 0x2ee   :  { %379 = vadd.xlane.f32.xlu0 %v378_v53 }
 0x2f0   :  { %v930_v54 = vpop.eup %929 }
 0x2f1   :  { %v550_v55 = vsel %vm202_vm5, %v930_v54, 0.0 }
 0x2f2   :  { %551 = vadd.xlane.f32.xlu1 %v550_v55 }
 0x2f4   :  { %v932_v56 = vpop.eup %931 }
 0x2f5   :  { %v718_v57 = vsel %vm202_vm5, %v932_v56, 0.0 }
 0x2f6   :  { %719 = vadd.xlane.f32.xlu0 %v718_v57 }
 0x303   :  { %555 = vrot.lane.b32.xlu1 %v1078_v5, %s1021_s6 }
 0x307   :  { %723 = vrot.lane.b32.xlu1 %v1078_v5, %s1022_s7 }
 0x30c   :  { %383 = vrot.lane.b32.xlu0 %v1073_v3, %s1022_s7 }
 0x377   :  { %v211_v58 = vpop.xlane.xlu1 %210 }
 0x378   :  { %933 = vrcp.f32 %v211_v58 }
 0x37b   :  { %v380_v59 = vpop.xlane.xlu0 %379 }
 0x37c   :  { %935 = vrcp.f32 %v380_v59 }
 0x37f   :  { %v552_v60 = vpop.xlane.xlu1 %551 }
 0x380   :  { %937 = vrcp.f32 %v552_v60 }
 0x382   :  { %v934_v61 = vpop.eup %933 }
 0x383   :  { %v213_v62 = vmul.f32 %v934_v61, %v926_v49  ;;  %v720_v63 = vpop.xlane.xlu0 %719  ;;  %v556_v4 = vpop.permute.xlu1 %555 }
 0x384   :  { %939 = vrcp.f32 %v720_v63 }
 0x385   :  { %880 = vmatmul.mubr.msk.f32.vlgmr.msra.gmra.mrb[2].mxu0 %vm125_vm3, %v213_v62 }
 0x386   :  { %v936_v1 = vpop.eup %935  ;;  %889 = vmatprep.mubr.msk.f32.mxu0 %vm1016_vm0, %v1015_v0 }
 0x387   :  { %v382_v2 = vmul.f32 %v936_v1, %v928_v52  ;;  %v384_v5 = vpop.permute.xlu0 %383  ;;  %v724_v7 = vpop.permute.xlu1 %723 }
 0x388   :  { %888 = vmatpush3.msk.msra.mxu0 %vm219_vm6, %v384_v5 }
 0x389   :  { %890 = vmatmul.mubr.msk.f32.vlgmr.msra.gmra.mrb[4].mxu0 %vm125_vm3, %v382_v2  ;;  %897 = vmatprep.subr.mxu0 %v1015_v0 }
 0x38a   :  { %v938_v3 = vpop.eup %937  ;;  %898 = vmatpush3.msk.msra.mxu0 %vm219_vm6, %v556_v4  ;;  %899 = vmatprep.mubr.msk.f32.mxu0 %vm1016_vm0, %v1015_v0 }
 0x38b   :  { %v554_v6 = vmul.f32 %v938_v3, %v930_v54  ;;  %907 = vmatprep.subr.mxu0 %v1015_v0 }
 0x38d   :  { %900 = vmatmul.mubr.msk.f32.vlgmr.msra.gmra.mrb[6].mxu0 %vm125_vm3, %v554_v6 }
 0x38e   :  { %v940_v8 = vpop.eup %939  ;;  %908 = vmatpush3.msk.msra.mxu0 %vm219_vm6, %v724_v7  ;;  %909 = vmatprep.mubr.msk.f32.mxu0 %vm1016_vm0, %v1015_v0 }
 0x38f   :  { %v722_v9 = vmul.f32 %v940_v8, %v932_v56 }
 0x391   :  { %910 = vmatmul.mubr.msk.f32.vlgmr.msra.gmra.mrb[8].mxu0 %vm125_vm3, %v722_v9 }
 0x458   :  { %v288_v10 = vpop.f32.mrb[2].mxu0 }
 0x459   :  { %v881_v11 = vpop.f32.mrb[3].mxu0 }
 0x45c   :  { %v456_v12 = vpop.f32.mrb[4].mxu0 }
 0x45d   :  { %461 = vrot.lane.b32.xlu0 %v456_v12, %s1023_s8  ;;  %v891_v13 = vpop.f32.mrb[5].mxu0 }
 0x460   :  { %v628_v14 = vpop.f32.mrb[6].mxu0 }
 0x461   :  { %v901_v15 = vpop.f32.mrb[7].mxu0 }
 0x464   :  { %v796_v16 = vpop.f32.mrb[8].mxu0 }
 0x465   :  { %801 = vrot.lane.b32.xlu1 %v796_v16, %s1023_s8  ;;  %v911_v17 = vpop.f32.mrb[9].mxu0 }
 0x4cf   :  { %v462_v18 = vpop.permute.xlu0 %461 }
 0x4d0   :  { %v464_v0 = vsel %vm125_vm3, %v288_v10, %v462_v18 }
 0x4d7   :  { %v802_v19 = vpop.permute.xlu1 %801 }
 0x4d8   :  { %v804_v20 = vsel %vm125_vm3, %v628_v14, %v802_v19 }
 0x4d9   :  { %v806_v21 = vrot.slane %v804_v20, 6 }
 0x4db   :  { %v808_v22 = vsel %vm219_vm6, %v464_v0, %v806_v21 }
 0x4dc   :  { %v809_v23 = vmul.f32 10000.0, %v808_v22 }
 0x4de   :  { %v912_v24 = vround.rtne.f32 %v809_v23 }
 0x4e0   :  { %v812_v25 = vmul.f32 0.0001, %v912_v24 }
 0x4e2   :  { %814 = vst.msk [vmem:[#allocation7] sm:$0xf] %vm813_vm7, %v812_v25 }
 0x4e3   :  { %996 = shalt.err (!%p993_p6)
}
 0x4e4   :  { %s997_s14 = scalar_lea.hbm %s1151_s2, 64 }
 0x4e5   :  { %p998_p7 = scmp.ne.s32.totalorder %s1151_s2, %s997_s14  ;;  %p1001_p8 = scmp.lt.u32.totalorder %s997_s14, %s1151_s2 }
 0x4e7   :  { %p1003_p9 = pnand %p1001_p8, %p998_p7 }
 0x4e9   :  { %1006 = shalt.err (!%p1003_p9)
}
 0x4ea   :  { %824 = dma.vmem_to_hbm [thread:$0]  %s822_s10, 64, %s1151_s2, [#allocation4]  }
 0x4eb   :  { %1011 = dma.done.wait [#allocation4], 64  }
 0x4ec   :  { %1012 = vsyncadd [#allocation4], 4294967232 }
 0x4ed   :  { %828 = vsyncpa [#allocation3], 1 }
 0x4ee   :  { %829 = vsyncpa [#allocation6], 1 }
 0x4ef   :  { %830 = vsyncpa [#allocation4], 1 }

</bundles_post_ra>
